<compile_context>
chip_gen: v6e
topology: v6e:2x2x1
jax: 0.10.0
libtpu: 0.0.40
codegen_flags: <defaults>
</compile_context>

<pallas_src>
import jax
import jax.numpy as jnp
from jax.experimental import pallas as pl
from jax.experimental.pallas import tpu as pltpu

HIDDEN_DIM = 20
LANE = 128


def _round_up(x, m):
    return ((x + m - 1) // m) * m


def _mlp_kernel(t_ref, w2t_ref, pk_ref, o_ref):
    # t_ref: (1, TILE) -- samples live on the 128-wide lane axis.
    t = t_ref[...]

    # Packed tiny params: columns [w1^T, b1^T, b2^T, w3_col, b3_bcast], shape (H, 5).
    w1 = pk_ref[:, 0:1]     # (H, 1)
    b1 = pk_ref[:, 1:2]     # (H, 1)
    b2 = pk_ref[:, 2:3]     # (H, 1)
    w3 = pk_ref[:, 3:4]     # (H, 1)
    b3 = pk_ref[0:1, 4:5]   # (1, 1)

    # Layer 1 (in_features=1): outer product as VPU broadcast multiply-add.
    # (H,1)*(1,TILE)+(H,1) -> (H,TILE); tanh hits the EUP slot.
    h1 = jnp.tanh(w1 * t + b1)

    # Layer 2: (H,H) @ (H,TILE) on the MXU with f32 accumulation.
    h2 = jnp.dot(w2t_ref[...], h1, preferred_element_type=jnp.float32) + b2
    h2 = jnp.tanh(h2)

    # Layer 3 (out_features=1): broadcast-mul + sublane reduce -> lane-dense (1, TILE).
    y = jnp.sum(w3 * h2, axis=0, keepdims=True) + b3
    o_ref[...] = y.astype(o_ref.dtype)


def free_fall_pinn_forward(t, params, *, max_tile=8192):
    """t: (N, 1) float32. params: dict of w1,b1,w2,b2,w3,b3 (y = t @ W + b layout).
    Returns (N, 1) float32."""
    N = t.shape[0]
    assert t.shape == (N, 1)
    assert max_tile % LANE == 0, "max_tile must be a multiple of 128 (lane width)"

    H = params["w2"].shape[0]

    # ---- tile / grid selection -------------------------------------------------
    # Lane-dense layout: flatten samples onto the lane axis; big tiles amortize the
    # ~0.35 us per-grid-step overhead.  Per-step VMEM ~= 320 B * tile, so the default
    # 8K tile stays well inside every generation's scoped-VMEM default.
    n128 = _round_up(N, LANE)
    tile = min(max_tile, n128)
    grid_n = pl.cdiv(n128, tile)
    if grid_n == 1 and n128 >= 2 * LANE:
        # Keep >= 2 grid steps so v7x's second TensorCore (megacore "parallel"
        # sharding) gets work; costs only one extra tiny step on v5e/v6e.
        tile = max(LANE, (n128 // 2 // LANE) * LANE)
        grid_n = pl.cdiv(n128, tile)
    n_pad = grid_n * tile

    # ---- input layout (pad only if needed) --------------------------------------
    t_flat = t.reshape(N)
    if n_pad != N:
        t_flat = jnp.pad(t_flat, (0, n_pad - N))
    t_row = t_flat.reshape(1, n_pad)

    # ---- pack the tiny per-layer operands into one (H, 5) array -----------------
    w1c = params["w1"].reshape(H, 1)                       # (1,H) -> (H,1)
    b1c = params["b1"].reshape(H, 1)
    b2c = params["b2"].reshape(H, 1)
    w3c = params["w3"].reshape(H, 1)                       # already (H,1)
    b3c = jnp.broadcast_to(params["b3"].reshape(1, 1), (H, 1))
    packed = jnp.concatenate([w1c, b1c, b2c, w3c, b3c], axis=1)   # (H, 5)

    w2t = params["w2"].T                                   # (H, H)

    # ---- cost estimate (per padded sample: ~2H^2 + 4H flops, 2H transcendentals) -
    cost = pl.CostEstimate(
        flops=int((2 * H * H + 4 * H) * n_pad),
        transcendentals=int(2 * H * n_pad),
        bytes_accessed=int(8 * n_pad + 4 * (H * H + 5 * H)),
    )

    y_row = pl.pallas_call(
        _mlp_kernel,
        out_shape=jax.ShapeDtypeStruct((1, n_pad), jnp.float32),
        grid_spec=pltpu.PrefetchScalarGridSpec(
            num_scalar_prefetch=0,
            grid=(grid_n,),
            in_specs=[
                pl.BlockSpec((1, tile), lambda i: (0, i)),   # t tile (lane-dense)
                pl.BlockSpec((H, H), lambda i: (0, 0)),      # w2^T (resident)
                pl.BlockSpec((H, 5), lambda i: (0, 0)),      # packed tiny params
            ],
            out_specs=pl.BlockSpec((1, tile), lambda i: (0, i)),  # lane-dense output slab
        ),
        compiler_params=pltpu.CompilerParams(
            dimension_semantics=("parallel",),
        ),
        cost_estimate=cost,
    )(t_row, w2t, packed)

    if n_pad == N:
        return y_row.reshape(N, 1)
    return y_row[0, :N].reshape(N, 1)


def init_params(key, hidden_dim=HIDDEN_DIM):
    """Deterministic init mimicking nn.Linear default: U(-1/sqrt(fan_in), 1/sqrt(fan_in)).
    Stored as (in_features, out_features) so the reference is y = t @ W + b."""
    ks = jax.random.split(key, 6)

    def uniform(k, shape, fan_in):
        bound = 1.0 / jnp.sqrt(jnp.float32(fan_in))
        return jax.random.uniform(k, shape, jnp.float32, -bound, bound)

    H = hidden_dim
    return {
        "w1": uniform(ks[0], (1, H), 1),
        "b1": uniform(ks[1], (1, H), 1),
        "w2": uniform(ks[2], (H, H), H),
        "b2": uniform(ks[3], (1, H), H),
        "w3": uniform(ks[4], (H, 1), H),
        "b3": uniform(ks[5], (1, 1), H),
    }


def _reference_forward(t, params):
    h1 = jnp.tanh(t @ params["w1"] + params["b1"])
    h2 = jnp.tanh(h1 @ params["w2"] + params["b2"])
    return h2 @ params["w3"] + params["b3"]


if __name__ == "__main__":
    key = jax.random.PRNGKey(0)
    params = init_params(key, hidden_dim=HIDDEN_DIM)

    # N=200 mirrors t_test in FreeFallPINN.evaluate(): pads 200 -> 256, splits into
    # a 2-step parallel grid (tile=128) so the multi-tile + padded-tail path runs.
    N = 200
    t = jnp.linspace(0.0, 1.0, N, dtype=jnp.float32).reshape(N, 1)
    y = jax.block_until_ready(free_fall_pinn_forward(t, params))
    y_ref = _reference_forward(t, params)
    assert y.shape == (N, 1)
    assert jnp.allclose(y, y_ref, atol=1e-5, rtol=1e-5), "Pallas output mismatch vs reference"

    # N=50 mirrors n_phys_points in train_model: single-tile path (grid=(1,)).
    N1 = 50
    t1 = jnp.linspace(0.0, 2.0, N1, dtype=jnp.float32).reshape(N1, 1)
    y1 = jax.block_until_ready(free_fall_pinn_forward(t1, params))
    y1_ref = _reference_forward(t1, params)
    assert jnp.allclose(y1, y1_ref, atol=1e-5, rtol=1e-5), "Pallas output mismatch vs reference"

    # Larger aligned case: 1536 samples -> 2 steps of tile=768, no pad / no slice.
    N2 = 1536
    t2 = jnp.linspace(0.0, 2.0, N2, dtype=jnp.float32).reshape(N2, 1)
    y2 = jax.block_until_ready(free_fall_pinn_forward(t2, params))
    y2_ref = _reference_forward(t2, params)
    assert jnp.allclose(y2, y2_ref, atol=1e-5, rtol=1e-5), "Pallas output mismatch vs reference"

    # TODO(synk): physics_loss / data_loss need grad-of-grad through the forward;
    # pallas_call has no autodiff rule here, so training-time losses stay in plain
    # JAX (jax.grad of _reference_forward) until a fused custom-VJP kernel is added.

    print("KERNEL_OK")
</pallas_src>

<mosaic_0001>
module attributes {stable_mosaic.version = 11 : i64} {
  func.func @_mlp_kernel(%arg0: i32, %arg1: memref<1x128xf32, #tpu.memory_space<vmem>>, %arg2: memref<20x20xf32, #tpu.memory_space<vmem>>, %arg3: memref<20x5xf32, #tpu.memory_space<vmem>>, %arg4: memref<1x128xf32, #tpu.memory_space<vmem>>) attributes {dimension_semantics = [#tpu.dimension_semantics<parallel>], iteration_bounds = array<i64: 2>, scalar_prefetch = 0 : i64, scratch_operands = 0 : i64, tpu.core_type = #tpu.core_type<tc>, window_params = [{transform_indices = @transform_0, window_bounds = array<i64: 1, 128>}, {pipeline_mode = #tpu.pipeline_mode<synchronous>, transform_indices = @transform_1, window_bounds = array<i64: 20, 20>}, {pipeline_mode = #tpu.pipeline_mode<synchronous>, transform_indices = @transform_2, window_bounds = array<i64: 20, 5>}, {transform_indices = @transform_3, window_bounds = array<i64: 1, 128>}]} {
    %c0 = arith.constant 0 : index
    %c0_0 = arith.constant 0 : index
    %0 = vector.load %arg1[%c0, %c0_0] : memref<1x128xf32, #tpu.memory_space<vmem>>, vector<1x128xf32>
    %c0_1 = arith.constant 0 : index
    %c0_2 = arith.constant 0 : index
    %1 = vector.load %arg3[%c0_1, %c0_2] : memref<20x5xf32, #tpu.memory_space<vmem>>, vector<20x1xf32>
    %c0_3 = arith.constant 0 : index
    %c1 = arith.constant 1 : index
    %2 = vector.load %arg3[%c0_3, %c1] : memref<20x5xf32, #tpu.memory_space<vmem>>, vector<20x1xf32>
    %c0_4 = arith.constant 0 : index
    %c2 = arith.constant 2 : index
    %3 = vector.load %arg3[%c0_4, %c2] : memref<20x5xf32, #tpu.memory_space<vmem>>, vector<20x1xf32>
    %c0_5 = arith.constant 0 : index
    %c3 = arith.constant 3 : index
    %4 = vector.load %arg3[%c0_5, %c3] : memref<20x5xf32, #tpu.memory_space<vmem>>, vector<20x1xf32>
    %c0_6 = arith.constant 0 : index
    %c4 = arith.constant 4 : index
    %5 = vector.load %arg3[%c0_6, %c4] : memref<20x5xf32, #tpu.memory_space<vmem>>, vector<1x1xf32>
    %6 = vector.broadcast %1 : vector<20x1xf32> to vector<20x128xf32>
    %7 = vector.broadcast %0 : vector<1x128xf32> to vector<20x128xf32>
    %8 = arith.mulf %6, %7 : vector<20x128xf32>
    %9 = vector.broadcast %2 : vector<20x1xf32> to vector<20x128xf32>
    %10 = arith.addf %8, %9 : vector<20x128xf32>
    %11 = math.tanh %10 : vector<20x128xf32>
    %c0_7 = arith.constant 0 : index
    %c0_8 = arith.constant 0 : index
    %12 = vector.load %arg2[%c0_7, %c0_8] : memref<20x20xf32, #tpu.memory_space<vmem>>, vector<20x20xf32>
    %cst = arith.constant dense<0.000000e+00> : vector<20x128xf32>
    %13 = tpu.matmul %12, %11, %cst {dimension_numbers = #tpu.dot_dimension_numbers<[1], [0], [0], [1], [0, 0, 1, 1], [], []>} : vector<20x20xf32>, vector<20x128xf32>, vector<20x128xf32> -> vector<20x128xf32>
    %14 = vector.broadcast %3 : vector<20x1xf32> to vector<20x128xf32>
    %15 = arith.addf %13, %14 : vector<20x128xf32>
    %16 = math.tanh %15 : vector<20x128xf32>
    %17 = vector.broadcast %4 : vector<20x1xf32> to vector<20x128xf32>
    %18 = arith.mulf %17, %16 : vector<20x128xf32>
    %cst_9 = arith.constant dense<0.000000e+00> : vector<128xf32>
    %19 = vector.multi_reduction <add>, %18, %cst_9 [0] : vector<20x128xf32> to vector<128xf32>
    %20 = vector.shape_cast %19 : vector<128xf32> to vector<1x128xf32>
    %21 = vector.broadcast %5 : vector<1x1xf32> to vector<1x128xf32>
    %22 = arith.addf %20, %21 : vector<1x128xf32>
    %c0_10 = arith.constant 0 : index
    %c0_11 = arith.constant 0 : index
    %23 = vector.load %arg4[%c0_10, %c0_11] : memref<1x128xf32, #tpu.memory_space<vmem>>, vector<1x128xf32>
    tpu.vector_store %arg4[%c0_10, %c0_11], %22 {strides = array<i32>} : memref<1x128xf32, #tpu.memory_space<vmem>>, vector<1x128xf32>,
    return
  }
  func.func @transform_0(%arg0: i32) -> (i32, i32) {
    %c0_i32 = arith.constant 0 : i32
    %c0_i32_0 = arith.constant 0 : i32
    return %c0_i32, %arg0 : i32, i32
  }
  func.func @transform_1(%arg0: i32) -> (i32, i32) {
    %c0_i32 = arith.constant 0 : i32
    %c0_i32_0 = arith.constant 0 : i32
    %c0_i32_1 = arith.constant 0 : i32
    return %c0_i32, %c0_i32_0 : i32, i32
  }
  func.func @transform_2(%arg0: i32) -> (i32, i32) {
    %c0_i32 = arith.constant 0 : i32
    %c0_i32_0 = arith.constant 0 : i32
    %c0_i32_1 = arith.constant 0 : i32
    return %c0_i32, %c0_i32_0 : i32, i32
  }
  func.func @transform_3(%arg0: i32) -> (i32, i32) {
    %c0_i32 = arith.constant 0 : i32
    %c0_i32_0 = arith.constant 0 : i32
    return %c0_i32, %arg0 : i32, i32
  }
}

</mosaic_0001>

<bundles_post_ra>
// kernel: tpu_custom_call.1
= control target key start
LH: loop header
LB: loop body
LE: loop exit
PB: predicated region body
PF: predicated region fallthrough
CT: control target
= control target key end

     0   :  { %8 = vsyncpa [#allocation3], 0  ;;  %s729_s0 = inlined_call_operand.vmem [shape: f32[1,256], index: 0, kind: input, shape index: {}]   ;;  %s730_s1 = inlined_call_operand.vmem [shape: f32[20,20], index: 1, kind: input, shape index: {}]   ;;  %s731_s2 = inlined_call_operand.vmem [shape: f32[20,5], index: 2, kind: input, shape index: {}]   ;;  %s732_s3 = inlined_call_operand.hbm [shape: f32[1,256], index: 3, kind: output, shape index: {}]  }
   0x1   :  { %10 = vsyncpa [#allocation3 + $0x1], 0  ;;  %s615_s12 = smov 0   ;;  %s617_s13 = smov 0  }
   0x2   :  { %s619_s14 = smov 0   ;;  %s621_s15 = smov 0  }
   0x3 LB: > { %s636_s16 = sadd.s32 4294967295, %s585_s15   ;;  %s417_s17 = sadd.s32 4294967294, %s585_s15   ;;  %s585_s15 = sphi %s621_s15, %s738_s15   ;;  %s581_s14 = sphi %s619_s14, %s737_s14   ;;  %s577_s13 = sphi %s617_s13, %s736_s13   ;;  %s573_s12 = sphi %s615_s12, %s735_s12  }
   0x4   : > { %s640_s18 = sadd.s32 1, %s585_s15   ;;  %s91_s19 = sadd.s32 1, %s581_s14 }
   0x5   : > { %s88_s20 = ssub.s32 %s585_s15, %s640_s18  ;;  %p101_p0 = scmp.ne.s32.totalorder %s581_s14, %s577_s13 }
   0x6   : > { %p89_p1 = scmp.eq.s32.totalorder %s88_s20, 0  ;;  %p102_p2 = scmp.eq.s32.totalorder %s636_s16, 1 }
   0x7   : > { %p107_p3 = scmp.ne.s32.totalorder %s577_s13, %s573_s12  ;;  %p108_p4 = scmp.eq.s32.totalorder %s417_s17, 1 }
   0x8   : > { %s651_s21 = scalar_select %p89_p1, %s581_s14, %s91_s19  }
   0x9   : > { %p653_p5 = por %p102_p2, %p101_p0  ;;  %p657_p6 = por %p108_p4, %p107_p3 }
   0xa   : > { %p420_p7 = scmp.ge.s32.totalorder %s585_s15, 1  ;;  %p138_p8 = scmp.lt.s32.totalorder %s585_s15, 3 }
   0xc   : > { %p139_p9 = pnand %p420_p7, %p138_p8 }
   0xd   : > { %p159_p10 = scmp.lt.s32.totalorder (!%p139_p9), %s636_s16, 1  ;;  %s157_s24 = sand.u32 (!%p139_p9), 1, %s577_s13  }
   0xe   : > { %142 = sbr.rel (%p139_p9) target bundleno = 418 (0x1a2), region = 32  ;;  %s426_s25 = sshll.u32 (!%p139_p9), %s636_s16, 4 }
   0xf   : > { %s158_s26 = scalar_lea.vmem (!%p139_p9), [#allocation2], %s157_s24  ;;  %s363_s30 = scalar_lea.hbm (!%p139_p9), %s732_s3, %s426_s25 }
  0x10   : > { %s365_s27 = sshll.u32 (!%p139_p9), %s158_s26, 4  ;;  %s353_s4 = scalar_lea.sflag (!%p139_p9), [#allocation3], %s157_s24  ;;  %s366_s27 = int_to_ptr.vmem [resolvable:$true] %s365_s27 }
  0x11   : > { %s594_s6 = smov (!%p139_p9), [#allocation2]  }
  0x12   : > { %s529_s7 = sshll.u32 (!%p139_p9), %s594_s6, 4  ;;  %s530_s7 = int_to_ptr.vmem [resolvable:$false] %s529_s7 }
  0x13   : > { %v165_v0 = vld [vmem:[%s731_s2 + $0x10] sm:$0xf]  ;;  %v587_v1 = vmov 1   ;;  %v588_v2 = vmov 0   ;;  %v164_v3 = vld [vmem:[%s731_s2 + $0x8] sm:$0xff]  ;;  %v163_v4 = vld [vmem:[%s731_s2] sm:$0xff]  ;;  %p532_p0 = scmp.lt.s32.totalorder %s366_s27, %s530_s7 }
  0x14   : > { %503 = vset.pattern.permute.xlu1 %v587_v1  ;;  %502 = vset.pattern.permute.xlu0 %v588_v2  ;;  %v589_v5 = vmov 0.0   ;;  %vm590_vm0 = vmmov 0   ;;  %v591_v6 = vmov 2   ;;  %v592_v7 = vmov 3   ;;  %v166_v9 = vld [vmem:[%s731_s2] sm:$0x1] }
  0x15   : > { %200 = vperm.xlu1 %503, %v165_v0   ;;  %179 = vperm.xlu0 %502, %v165_v0   ;;  %v593_v8 = vmov 4   ;;  %s160_s5 = scalar_select %p159_p10, %s636_s16, 1  ;;  %vm234_vm1 = vcmask 1043456   ;;  %v209_v26 = vld [vmem:[%s730_s1] sm:$0xff]  ;;  %vm224_vm2 = vcmask 162816   ;;  %v210_v27 = vld [vmem:[%s730_s1 + $0x8] sm:$0xff] }
  0x16   : > { %435 = vmatprep.subr.mxu0 %v589_v5  ;;  %450 = vmatprep.subr.mxu1 %v589_v5  ;;  %v211_v28 = vld [vmem:[%s730_s1 + $0x10] sm:$0xf]  ;;  %s531_s16 = scalar_lea.vmem %s530_s7, 32 }
  0x17   : > { %441 = vmatprep.mubr.msk.f32.mxu0 %vm590_vm0, %v589_v5  ;;  %444 = vmatprep.mubr.msk.f32.mxu1 %vm590_vm0, %v589_v5  ;;  %s161_s8 = scalar_lea.vmem %s729_s0, %s160_s5  ;;  %s525_s5 = scalar_lea.vmem %s366_s27, 16 }
  0x18   : > { %v421_v10 = vld [vmem:[%s161_s8] ss:$0 sm:$0xff]  ;;  %p526_p11 = scmp.ne.s32.totalorder %s366_s27, %s525_s5  ;;  %p533_p1 = scmp.lt.s32.totalorder %s531_s16, %s525_s5 }
  0x19   : > { %504 = vset.pattern.permute.xlu1 %v588_v2  ;;  %174 = vperm.xlu0 %502, %v164_v3  }
  0x1a   : > { %169 = vperm.xlu1 %504, %v163_v4   ;;  %p527_p12 = pnand %p526_p11, %p653_p5  ;;  %p534_p2 = por %p533_p1, %p532_p0 }
  0x1c   : > { %p528_p13 = pneg %p527_p12 }
  0x1d   : > { %505 = vset.pattern.permute.xlu0 %v587_v1 }
  0x1e   : > { %196 = vperm.xlu0 %505, %v164_v3   ;;  %506 = vset.pattern.permute.xlu1 %v587_v1  ;;  %p535_p3 = pnand %p534_p2, %p528_p13 }
  0x1f   : > { %192 = vperm.xlu1 %506, %v163_v4  }
  0x22   : > { %508 = vset.pattern.permute.xlu0 %v591_v6 }
  0x23   : > { %507 = vset.pattern.permute.xlu1 %v591_v6  ;;  %217 = vperm.xlu0 %508, %v164_v3  }
  0x24   : > { %213 = vperm.xlu1 %507, %v163_v4  }
  0x27   : > { %510 = vset.pattern.permute.xlu0 %v592_v7 }
  0x28   : > { %221 = vperm.xlu1 %507, %v165_v0   ;;  %326 = vperm.xlu0 %510, %v164_v3  }
  0x2c   : > { %509 = vset.pattern.permute.xlu1 %v592_v7  ;;  %512 = vset.pattern.permute.xlu0 %v593_v8 }
  0x2d   : > { %322 = vperm.xlu1 %509, %v163_v4  }
  0x31   : > { %330 = vperm.xlu1 %509, %v165_v0  }
  0x35   : > { %511 = vset.pattern.permute.xlu1 %v593_v8 }
  0x36   : > { %347 = vperm.xlu1 %511, %v166_v9  }
  0x90   : > { %v180_v11 = vpop.permute.xlu0 %179  ;;  %v201_v12 = vpop.permute.xlu1 %200 }
  0x91   : > { %v190_v13 = vmul.f32 %v421_v10, %v180_v11 }
  0x93   : > { %v205_v14 = vadd.f32 %v201_v12, %v190_v13 }
  0x94   : > { %v175_v15 = vpop.permute.xlu0 %174 }
  0x95   : > { %513 = vtanh.f32 %v205_v14  ;;  %v170_v16 = vpop.permute.xlu1 %169  ;;  %v189_v17 = vmul.f32 %v421_v10, %v175_v15 }
  0x96   : > { %v188_v18 = vmul.f32 %v421_v10, %v170_v16 }
  0x99   : > { %v197_v19 = vpop.permute.xlu0 %196 }
  0x9a   : > { %v204_v20 = vadd.f32 %v197_v19, %v189_v17  ;;  %v193_v21 = vpop.permute.xlu1 %192 }
  0x9b   : > { %v203_v22 = vadd.f32 %v193_v21, %v188_v18 }
  0x9c   : > { %515 = vtanh.f32 %v204_v20 }
  0x9d   : > { %517 = vtanh.f32 %v203_v22 }
  0x9e   : > { %v218_v30 = vpop.permute.xlu0 %217 }
  0x9f   : > { %v214_v29 = vpop.permute.xlu1 %213 }
  0xa2   : > { %v514_v23 = vpop.eup %513 }
  0xa3   : > { %436 = vmatpush3.msk.msra.mxu0 %vm234_vm1, %v514_v23  ;;  %453 = vmatpush3.msk.msra.mxu1 %vm234_vm1, %v514_v23  ;;  %v222_v37 = vpop.permute.xlu1 %221  ;;  %v327_v42 = vpop.permute.xlu0 %326 }
  0xa4   : > { %437 = vmatprep.subr.mxu0 %v589_v5  ;;  %451 = vmatprep.subr.mxu1 %v589_v5 }
  0xa8   : > { %v323_v41 = vpop.permute.xlu1 %322 }
  0xa9   : > { %v516_v24 = vpop.eup %515 }
  0xaa   : > { %v518_v25 = vpop.eup %517  ;;  %438 = vmatpush3.msra.mxu0 %v516_v24  ;;  %454 = vmatpush3.msra.mxu1 %v516_v24 }
  0xab   : > { %439 = vmatprep.subr.mxu0 %v589_v5  ;;  %452 = vmatprep.subr.mxu1 %v589_v5 }
  0xac   : > { %440 = vmatpush3.msra.mxu0 %v518_v25  ;;  %455 = vmatpush3.msra.mxu1 %v518_v25  ;;  %v331_v48 = vpop.permute.xlu1 %330 }
  0xad   : > { %442 = vmatmul.mubr.msk.f32.vlgmr.msra.gmra.mxu0 %vm224_vm2, %v209_v26  ;;  %445 = vmatmul.mubr.msk.f32.vlgmr.msra.gmra.mxu1 %vm224_vm2, %v210_v27 }
  0xae   : > { %447 = vmatprep.mubr.msk.f32.mxu1 %vm590_vm0, %v589_v5 }
  0xb1   : > { %448 = vmatmul.mubr.msk.f32.gmra.mxu1 %vm224_vm2, %v211_v28  ;;  %v348_v58 = vpop.permute.xlu1 %347 }
 0x16d   : > { %v304_v31 = vpop.f32.mrf.mxu0  ;;  %v309_v32 = vpop.f32.mrf.mxu1 }
 0x16e   : > { %v305_v33 = vadd.f32 %v304_v31, %v214_v29  ;;  %v310_v34 = vadd.f32 %v309_v32, %v218_v30 }
 0x16f   : > { %v446_v35 = vpop.f32.mrf.mxu1  ;;  %v443_v36 = vpop.f32.mrf.mxu0 }
 0x170   : > { %519 = vtanh.f32 %v305_v33 }
 0x171   : > { %521 = vtanh.f32 %v310_v34  ;;  %v314_v38 = vpop.f32.mrf.mxu1 }
 0x172   : > { %v315_v39 = vadd.f32 %v314_v38, %v222_v37 }
 0x173   : > { %v449_v40 = vpop.f32.mrf.mxu1 }
 0x174   : > { %523 = vtanh.f32 %v315_v39 }
 0x17d   : > { %v520_v43 = vpop.eup %519 }
 0x17e   : > { %v522_v44 = vpop.eup %521  ;;  %v333_v45 = vmul.f32 %v520_v43, %v323_v41 }
 0x17f   : > { %v334_v46 = vmul.f32 %v522_v44, %v327_v42 }
 0x181   : > { %v524_v47 = vpop.eup %523  ;;  %v336_v50 = vadd.f32 %v334_v46, %v333_v45 }
 0x182   : > { %v335_v49 = vmul.f32 %v524_v47, %v331_v48 }
 0x184   : > { %v337_v51 = vsel %vm234_vm1, %v335_v49, 0.0 }
 0x185   : > { %v338_v52 = vadd.f32 %v337_v51, %v336_v50 }
 0x187   : > { %v339_v53 = vrot.slane %v338_v52, 4 }
 0x189   : > { %v340_v54 = vadd.f32 %v339_v53, %v338_v52 }
 0x18b   : > { %v341_v55 = vrot.slane %v340_v54, 2 }
 0x18d   : > { %v342_v56 = vadd.f32 %v341_v55, %v340_v54 }
 0x18f   : > { %v343_v57 = vrot.slane %v342_v56, 1 }
 0x191   : > { %v344_v59 = vadd.f32 %v343_v57, %v342_v56 }
 0x193   : > { %v350_v60 = vadd.f32 %v348_v58, %v344_v59 }
 0x195   : > { %351 = vst [vmem:[%s158_s26] sm:$0x1] %v350_v60 }
 0x196   : > { %538 = shalt.err (!%p535_p3)
}
 0x197   : > { %s539_s8 = scalar_lea.hbm %s363_s30, 16  ;;  %s543_s11 = scalar_lea.hbm %s732_s3, 32 }
 0x198   : > { %p540_p4 = scmp.ne.s32.totalorder %s363_s30, %s539_s8  ;;  %p544_p9 = scmp.lt.s32.totalorder %s363_s30, %s732_s3 }
 0x199   : > { %p545_p10 = scmp.lt.s32.totalorder %s543_s11, %s539_s8 }
 0x19a   : > { %p541_p7 = pnand %p540_p4, %p653_p5 }
 0x19b   : > { %p546_p11 = por %p545_p10, %p544_p9 }
 0x19c   : > { %p542_p8 = pneg %p541_p7 }
 0x19e   : > { %p547_p12 = pnand %p546_p11, %p542_p8 }
 0x1a0   : > { %550 = shalt.err (!%p547_p12)
}
 0x1a1   : > { %456 = dma.vmem_to_hbm [thread:$0]  (%p653_p5), %s366_s27, 16, %s363_s30, %s353_s4  }
 0x1a2 PF: > { %p462_p13 = scmp.ge.s32.totalorder %s585_s15, 2  ;;  %s377_s20 = sand.u32 1, %s573_s12  }
 0x1a3   : > { %s378_s24 = scalar_lea.sflag [#allocation3], %s377_s20 }
 0x1a4   : > { %p459_p0 = pnand %p462_p13, %p657_p6 }
 0x1a6   : > { %p460_p1 = pneg %p459_p0 }
 0x1a8   : > { %568 = dma.done.wait (%p460_p1), %s378_s24, 16  }
 0x1a9   : > { %570 = vsyncadd (%p460_p1), %s378_s24, 4294967280  ;;  %p13_p2 = scmp.ge.s32.totalorder %s640_s18, 4   ;;  %s735_s12 = smov %s577_s13 }
 0x1aa   : > { %s736_s13 = smov %s581_s14  ;;  %s737_s14 = smov %s651_s21 }
 0x1ab   : > { %s738_s15 = smov %s640_s18  ;;  %15 = sbr.rel (!%p13_p2) target bundleno = 3 (0x3), region = 67 }
 0x1b0   :  { %382 = vsyncpa [#allocation3], 1 }
 0x1b1   :  { %384 = vsyncpa [#allocation3 + $0x1], 1 }

</bundles_post_ra>
